<compile_context>
chip_gen: v5e
topology: v5e:2x2
jax: 0.10.0
libtpu: 0.0.40
codegen_flags: <defaults>
</compile_context>

<pallas_src>
import functools

import jax
import jax.numpy as jnp
import numpy as np
from jax.experimental import pallas as pl
from jax.experimental.pallas import tpu as pltpu


def _round_up(x, m):
    return (x + m - 1) // m * m


def _splat_kernel(v_ref, u_ref, nid_ref, feat_ref, gv_ref, gu_ref,
                  out_ref, acc_ref, *, matmul_dtype):
    # v_ref/u_ref/nid_ref: (1, TN, 1)  projected row / col / -1/(scale*sigma^2)
    # feat_ref           : (1, TN, C)  features with visibility mask folded in
    # gv_ref/gu_ref      : (1, THW)    pixel row / col index of each flat pixel
    # out_ref            : (1, C, THW)
    # acc_ref            : (C, THW) f32 accumulator (resident across the N axis)
    n_idx = pl.program_id(2)

    @pl.when(n_idx == 0)
    def _():
        acc_ref[...] = jnp.zeros_like(acc_ref)

    v = v_ref[0]          # (TN, 1)
    u = u_ref[0]          # (TN, 1)
    nid = nid_ref[0]      # (TN, 1)
    gv = gv_ref[...]      # (1, THW)
    gu = gu_ref[...]      # (1, THW)

    dv = v - gv                         # (TN, THW)
    du = u - gu                         # (TN, THW)
    dist_sq = dv * dv + du * du         # (TN, THW)
    w = jnp.exp(dist_sq * nid)          # (TN, THW)  no divide, no mask mul

    feat = feat_ref[0]                  # (TN, C)
    # acc += feat^T @ w  -> (C, THW)  (contraction over TN, f32 accumulation)
    acc_ref[...] += jax.lax.dot_general(
        feat.astype(matmul_dtype), w.astype(matmul_dtype),
        (((0,), (0,)), ((), ())),
        preferred_element_type=jnp.float32,
    )

    @pl.when(n_idx == pl.num_programs(2) - 1)
    def _():
        out_ref[0] = acc_ref[...]


def project_point2image(K, RT, pts_3d, pts_feat, pts_scale, im_height, im_width,
                        *, t_hw=None, t_n=None, matmul_dtype=jnp.float32):
    """Pallas implementation of ProjectPoint2Image.forward (uv_only=False).

    Args:
      K: (3, 3) intrinsics (concrete), RT: (B, 3, 4), pts_3d: (B, N, 3),
      pts_feat: (B, N, C), pts_scale: (B, N).
    Returns:
      img: (B, C, H, W) float32.
    """
    B, N, C = pts_feat.shape
    HW = im_height * im_width
    # TODO(synk): sigma requires a concrete K (mirrors K[0,0].item() in torch);
    # will fail if K is a tracer.
    sigma = float(K[0, 0]) / (16.0 if N == 1 else 32.0)

    # --- projection glue (tiny: B x N x 3), matches the torch math exactly ---
    R = RT[:, :3, :3]
    T = RT[:, :3, 3]
    points_local = jnp.einsum('bij,bnj->bni', R, pts_3d) + T[:, None, :]  # (B, N, 3)
    points_proj = jnp.einsum('ij,bnj->bin', K, points_local)              # (B, 3, N)
    z = points_proj[:, 2]
    mask = (z > 0.1).astype(jnp.float32)
    zc = jnp.maximum(z, 0.1)                                              # clamp(min=0.1)
    u = points_proj[:, 0] / zc
    v = points_proj[:, 1] / zc

    # Hoisted per-point scalars (B*N work, effectively free):
    neg_inv_denom = -1.0 / (pts_scale.astype(jnp.float32) * (sigma * sigma))  # (B, N)
    feat_masked = pts_feat.astype(jnp.float32) * mask[..., None]              # (B, N, C)

    # --- tile sizes (lane-dense HW tiles, MXU-friendly N tiles) ---
    if t_hw is None:
        t_hw = min(2048, _round_up(HW, 128))
    t_hw = _round_up(t_hw, 128)
    if t_n is None:
        t_n = min(256, _round_up(N, 8))
    t_n = _round_up(t_n, 8)
    HW_pad = _round_up(HW, t_hw)
    N_pad = _round_up(N, t_n)

    def pad_n(x):  # pad point axis; padded rows have feat==0 -> contribute 0
        return jnp.pad(x, ((0, 0), (0, N_pad - N), (0, 0)))

    v_in = pad_n(v[..., None].astype(jnp.float32))          # (B, N_pad, 1)
    u_in = pad_n(u[..., None].astype(jnp.float32))          # (B, N_pad, 1)
    nid_in = pad_n(neg_inv_denom[..., None])                # (B, N_pad, 1)
    feat_in = pad_n(feat_masked)                            # (B, N_pad, C)

    # pixel grid, row-major: p = row * W + col
    grid_v = jnp.repeat(jnp.arange(im_height, dtype=jnp.float32), im_width)
    grid_u = jnp.tile(jnp.arange(im_width, dtype=jnp.float32), im_height)
    grid_v = jnp.pad(grid_v, (0, HW_pad - HW))[None, :]     # (1, HW_pad)
    grid_u = jnp.pad(grid_u, (0, HW_pad - HW))[None, :]     # (1, HW_pad)

    n_hw = HW_pad // t_hw
    n_n = N_pad // t_n

    kernel = functools.partial(_splat_kernel, matmul_dtype=matmul_dtype)
    out = pl.pallas_call(
        kernel,
        out_shape=jax.ShapeDtypeStruct((B, C, HW_pad), jnp.float32),
        grid=(B, n_hw, n_n),
        in_specs=[
            pl.BlockSpec((1, t_n, 1), lambda b, h, n: (b, n, 0)),   # v
            pl.BlockSpec((1, t_n, 1), lambda b, h, n: (b, n, 0)),   # u
            pl.BlockSpec((1, t_n, 1), lambda b, h, n: (b, n, 0)),   # -1/(scale*sigma^2)
            pl.BlockSpec((1, t_n, C), lambda b, h, n: (b, n, 0)),   # masked feat
            pl.BlockSpec((1, t_hw), lambda b, h, n: (0, h)),        # grid rows
            pl.BlockSpec((1, t_hw), lambda b, h, n: (0, h)),        # grid cols
        ],
        out_specs=pl.BlockSpec((1, C, t_hw), lambda b, h, n: (b, 0, h)),
        scratch_shapes=[pltpu.VMEM((C, t_hw), jnp.float32)],
        compiler_params=pltpu.CompilerParams(
            dimension_semantics=("parallel", "parallel", "arbitrary")),
    )(v_in, u_in, nid_in, feat_in, grid_v, grid_u)

    return out[:, :, :HW].reshape(B, C, im_height, im_width)


def _reference(K, RT, pts_3d, pts_feat, pts_scale, im_height, im_width):
    """Pure-JAX reference mirroring the torch module."""
    B, N, C = pts_feat.shape
    sigma = float(K[0, 0]) / (16.0 if N == 1 else 32.0)
    R = RT[:, :3, :3]
    T = RT[:, :3, 3]
    p_local = jnp.einsum('bij,bnj->bni', R, pts_3d) + T[:, None, :]
    p_proj = jnp.einsum('ij,bnj->bin', K, p_local)
    z = p_proj[:, 2]
    mask = (z > 0.1).astype(jnp.float32)
    zc = jnp.maximum(z, 0.1)
    u = p_proj[:, 0] / zc
    v = p_proj[:, 1] / zc
    uv = jnp.stack([v, u], axis=-1)                                   # (B, N, 2)
    rows, cols = jnp.meshgrid(jnp.arange(im_height), jnp.arange(im_width), indexing='ij')
    grid = jnp.stack([rows.reshape(-1), cols.reshape(-1)], axis=-1).astype(jnp.float32)
    dist = uv[:, :, None, :] - grid[None, None]                       # (B, N, HW, 2)
    dsq = dist[..., 0] ** 2 + dist[..., 1] ** 2
    w = jnp.exp(-dsq / (pts_scale[..., None] * sigma * sigma)) * mask[..., None]
    img = jnp.einsum('bnc,bnp->bcp', pts_feat, w)
    return img.reshape(B, C, im_height, im_width)


if __name__ == "__main__":
    B, N, C = 2, 8, 4
    H = W = 16

    key = jax.random.PRNGKey(0)
    k1, k2, k3, k4 = jax.random.split(key, 4)

    # Deterministic intrinsics (plays the role of the module's K buffer).
    focal = 32.0
    K = jnp.array([[focal, 0.0, W / 2.0],
                   [0.0, focal, H / 2.0],
                   [0.0, 0.0, 1.0]], dtype=jnp.float32)

    # Extrinsics: identity rotation, translation pushing points in front of the camera.
    R_eye = jnp.tile(jnp.eye(3, dtype=jnp.float32)[None], (B, 1, 1))
    Tvec = (jnp.array([[0.0, 0.0, 4.0]] * B, dtype=jnp.float32)
            + 0.1 * jax.random.normal(k1, (B, 3), dtype=jnp.float32))
    RT = jnp.concatenate([R_eye, Tvec[:, :, None]], axis=-1)          # (B, 3, 4)

    pts_3d = jax.random.uniform(k2, (B, N, 3), minval=-1.0, maxval=1.0, dtype=jnp.float32)
    pts_feat = jax.random.normal(k3, (B, N, C), dtype=jnp.float32)
    pts_scale = jax.random.uniform(k4, (B, N), minval=0.5, maxval=2.0, dtype=jnp.float32)

    # t_hw=128 exercises the multi-tile HW path (HW=256 -> 2 pixel tiles).
    img = project_point2image(K, RT, pts_3d, pts_feat, pts_scale, H, W, t_hw=128)
    img = jax.block_until_ready(img)

    ref = _reference(K, RT, pts_3d, pts_feat, pts_scale, H, W)
    np.testing.assert_allclose(np.asarray(img), np.asarray(ref), rtol=1e-3, atol=1e-3)
    assert img.shape == (B, C, H, W) and img.dtype == jnp.float32

    print("KERNEL_OK")
</pallas_src>

<mosaic_0001>
module attributes {stable_mosaic.version = 11 : i64} {
  func.func @_splat_kernel(%arg0: i32, %arg1: i32, %arg2: i32, %arg3: memref<1x8x1xf32, #tpu.memory_space<vmem>>, %arg4: memref<1x8x1xf32, #tpu.memory_space<vmem>>, %arg5: memref<1x8x1xf32, #tpu.memory_space<vmem>>, %arg6: memref<1x8x4xf32, #tpu.memory_space<vmem>>, %arg7: memref<1x128xf32, #tpu.memory_space<vmem>>, %arg8: memref<1x128xf32, #tpu.memory_space<vmem>>, %arg9: memref<1x4x128xf32, #tpu.memory_space<vmem>>, %arg10: memref<4x128xf32, #tpu.memory_space<vmem>>) attributes {dimension_semantics = [#tpu.dimension_semantics<parallel>, #tpu.dimension_semantics<parallel>, #tpu.dimension_semantics<arbitrary>], iteration_bounds = array<i64: 2, 2, 1>, scalar_prefetch = 0 : i64, scratch_operands = 1 : i64, tpu.core_type = #tpu.core_type<tc>, window_params = [{transform_indices = @transform_0, window_bounds = array<i64: 1, 8, 1>}, {transform_indices = @transform_1, window_bounds = array<i64: 1, 8, 1>}, {transform_indices = @transform_2, window_bounds = array<i64: 1, 8, 1>}, {transform_indices = @transform_3, window_bounds = array<i64: 1, 8, 4>}, {transform_indices = @transform_4, window_bounds = array<i64: 1, 128>}, {transform_indices = @transform_5, window_bounds = array<i64: 1, 128>}, {transform_indices = @transform_6, window_bounds = array<i64: 1, 4, 128>}]} {
    %c0_i32 = arith.constant 0 : i32
    %0 = arith.cmpi eq, %arg2, %c0_i32 : i32
    %1 = arith.extui %0 : i1 to i32
    %c0_i32_0 = arith.constant 0 : i32
    %2 = arith.cmpi ne, %1, %c0_i32_0 : i32
    scf.if %2 {
      %cst_22 = arith.constant 0.000000e+00 : f32
      %32 = vector.broadcast %cst_22 : f32 to vector<4x128xf32>
      %c0_23 = arith.constant 0 : index
      %c0_24 = arith.constant 0 : index
      %33 = vector.load %arg10[%c0_23, %c0_24] : memref<4x128xf32, #tpu.memory_space<vmem>>, vector<4x128xf32>
      tpu.vector_store %arg10[%c0_23, %c0_24], %32 {strides = array<i32>} : memref<4x128xf32, #tpu.memory_space<vmem>>, vector<4x128xf32>,
    } else {
    }
    %c0 = arith.constant 0 : index
    %c0_1 = arith.constant 0 : index
    %c0_2 = arith.constant 0 : index
    %3 = vector.load %arg3[%c0, %c0_1, %c0_2] : memref<1x8x1xf32, #tpu.memory_space<vmem>>, vector<1x8x1xf32>
    %4 = vector.shape_cast %3 : vector<1x8x1xf32> to vector<8x1xf32>
    %c0_3 = arith.constant 0 : index
    %c0_4 = arith.constant 0 : index
    %c0_5 = arith.constant 0 : index
    %5 = vector.load %arg4[%c0_3, %c0_4, %c0_5] : memref<1x8x1xf32, #tpu.memory_space<vmem>>, vector<1x8x1xf32>
    %6 = vector.shape_cast %5 : vector<1x8x1xf32> to vector<8x1xf32>
    %c0_6 = arith.constant 0 : index
    %c0_7 = arith.constant 0 : index
    %c0_8 = arith.constant 0 : index
    %7 = vector.load %arg5[%c0_6, %c0_7, %c0_8] : memref<1x8x1xf32, #tpu.memory_space<vmem>>, vector<1x8x1xf32>
    %8 = vector.shape_cast %7 : vector<1x8x1xf32> to vector<8x1xf32>
    %c0_9 = arith.constant 0 : index
    %c0_10 = arith.constant 0 : index
    %9 = vector.load %arg7[%c0_9, %c0_10] : memref<1x128xf32, #tpu.memory_space<vmem>>, vector<1x128xf32>
    %c0_11 = arith.constant 0 : index
    %c0_12 = arith.constant 0 : index
    %10 = vector.load %arg8[%c0_11, %c0_12] : memref<1x128xf32, #tpu.memory_space<vmem>>, vector<1x128xf32>
    %11 = vector.broadcast %4 : vector<8x1xf32> to vector<8x128xf32>
    %12 = vector.broadcast %9 : vector<1x128xf32> to vector<8x128xf32>
    %13 = arith.subf %11, %12 : vector<8x128xf32>
    %14 = vector.broadcast %6 : vector<8x1xf32> to vector<8x128xf32>
    %15 = vector.broadcast %10 : vector<1x128xf32> to vector<8x128xf32>
    %16 = arith.subf %14, %15 : vector<8x128xf32>
    %17 = arith.mulf %13, %13 : vector<8x128xf32>
    %18 = arith.mulf %16, %16 : vector<8x128xf32>
    %19 = arith.addf %17, %18 : vector<8x128xf32>
    %20 = vector.broadcast %8 : vector<8x1xf32> to vector<8x128xf32>
    %21 = arith.mulf %19, %20 : vector<8x128xf32>
    %22 = math.exp %21 : vector<8x128xf32>
    %c0_13 = arith.constant 0 : index
    %c0_14 = arith.constant 0 : index
    %c0_15 = arith.constant 0 : index
    %23 = vector.load %arg6[%c0_13, %c0_14, %c0_15] : memref<1x8x4xf32, #tpu.memory_space<vmem>>, vector<1x8x4xf32>
    %24 = vector.shape_cast %23 : vector<1x8x4xf32> to vector<8x4xf32>
    %c0_16 = arith.constant 0 : index
    %c0_17 = arith.constant 0 : index
    %25 = vector.load %arg10[%c0_16, %c0_17] : memref<4x128xf32, #tpu.memory_space<vmem>>, vector<4x128xf32>
    %cst = arith.constant dense<0.000000e+00> : vector<4x128xf32>
    %26 = tpu.matmul %24, %22, %cst {dimension_numbers = #tpu.dot_dimension_numbers<[0], [0], [1], [1], [0, 1, 1, 1], [], []>} : vector<8x4xf32>, vector<8x128xf32>, vector<4x128xf32> -> vector<4x128xf32>
    %27 = arith.addf %25, %26 : vector<4x128xf32>
    %c0_18 = arith.constant 0 : index
    %c0_19 = arith.constant 0 : index
    %28 = vector.load %arg10[%c0_18, %c0_19] : memref<4x128xf32, #tpu.memory_space<vmem>>, vector<4x128xf32>
    tpu.vector_store %arg10[%c0_18, %c0_19], %27 {strides = array<i32>} : memref<4x128xf32, #tpu.memory_space<vmem>>, vector<4x128xf32>,
    %c0_i32_20 = arith.constant 0 : i32
    %29 = arith.cmpi eq, %arg2, %c0_i32_20 : i32
    %30 = arith.extui %29 : i1 to i32
    %c0_i32_21 = arith.constant 0 : i32
    %31 = arith.cmpi ne, %30, %c0_i32_21 : i32
    scf.if %31 {
      %c0_22 = arith.constant 0 : index
      %c0_23 = arith.constant 0 : index
      %32 = vector.load %arg10[%c0_22, %c0_23] : memref<4x128xf32, #tpu.memory_space<vmem>>, vector<4x128xf32>
      %c0_24 = arith.constant 0 : index
      %c0_25 = arith.constant 0 : index
      %c0_26 = arith.constant 0 : index
      %33 = vector.load %arg9[%c0_24, %c0_25, %c0_26] : memref<1x4x128xf32, #tpu.memory_space<vmem>>, vector<1x4x128xf32>
      %34 = vector.shape_cast %33 : vector<1x4x128xf32> to vector<4x128xf32>
      %35 = vector.shape_cast %32 : vector<4x128xf32> to vector<1x4x128xf32>
      tpu.vector_store %arg9[%c0_24, %c0_25, %c0_26], %35 {strides = array<i32>} : memref<1x4x128xf32, #tpu.memory_space<vmem>>, vector<1x4x128xf32>,
    } else {
    }
    return
  }
  func.func @transform_0(%arg0: i32, %arg1: i32, %arg2: i32) -> (i32, i32, i32) {
    %c0_i32 = arith.constant 0 : i32
    %c0_i32_0 = arith.constant 0 : i32
    return %arg0, %arg2, %c0_i32 : i32, i32, i32
  }
  func.func @transform_1(%arg0: i32, %arg1: i32, %arg2: i32) -> (i32, i32, i32) {
    %c0_i32 = arith.constant 0 : i32
    %c0_i32_0 = arith.constant 0 : i32
    return %arg0, %arg2, %c0_i32 : i32, i32, i32
  }
  func.func @transform_2(%arg0: i32, %arg1: i32, %arg2: i32) -> (i32, i32, i32) {
    %c0_i32 = arith.constant 0 : i32
    %c0_i32_0 = arith.constant 0 : i32
    return %arg0, %arg2, %c0_i32 : i32, i32, i32
  }
  func.func @transform_3(%arg0: i32, %arg1: i32, %arg2: i32) -> (i32, i32, i32) {
    %c0_i32 = arith.constant 0 : i32
    %c0_i32_0 = arith.constant 0 : i32
    return %arg0, %arg2, %c0_i32 : i32, i32, i32
  }
  func.func @transform_4(%arg0: i32, %arg1: i32, %arg2: i32) -> (i32, i32) {
    %c0_i32 = arith.constant 0 : i32
    %c0_i32_0 = arith.constant 0 : i32
    return %c0_i32, %arg1 : i32, i32
  }
  func.func @transform_5(%arg0: i32, %arg1: i32, %arg2: i32) -> (i32, i32) {
    %c0_i32 = arith.constant 0 : i32
    %c0_i32_0 = arith.constant 0 : i32
    return %c0_i32, %arg1 : i32, i32
  }
  func.func @transform_6(%arg0: i32, %arg1: i32, %arg2: i32) -> (i32, i32, i32) {
    %c0_i32 = arith.constant 0 : i32
    %c0_i32_0 = arith.constant 0 : i32
    return %arg0, %c0_i32, %arg1 : i32, i32, i32
  }
}

</mosaic_0001>

<bundles_post_ra>
// kernel: tpu_custom_call.1
= control target key start
LH: loop header
LB: loop body
LE: loop exit
PB: predicated region body
PF: predicated region fallthrough
CT: control target
= control target key end

     0   :  { %11 = vsyncpa [#allocation4], 0  ;;  %s1019_s0 = inlined_call_operand.vmem [shape: f32[2,8,1], index: 0, kind: input, shape index: {}]   ;;  %s1020_s1 = inlined_call_operand.vmem [shape: f32[2,8,1], index: 1, kind: input, shape index: {}]   ;;  %s1021_s2 = inlined_call_operand.vmem [shape: f32[2,8,1], index: 2, kind: input, shape index: {}]   ;;  %s1022_s3 = inlined_call_operand.vmem [shape: f32[2,8,4], index: 3, kind: input, shape index: {}]   ;;  %s1023_s4 = inlined_call_operand.vmem [shape: f32[1,256], index: 4, kind: input, shape index: {}]   ;;  %s1024_s5 = inlined_call_operand.vmem [shape: f32[1,256], index: 5, kind: input, shape index: {}]   ;;  %s1025_s6 = inlined_call_operand.hbm [shape: f32[2,4,256], index: 6, kind: output, shape index: {}]  }
   0x1   :  { %13 = vsyncpa [#allocation4 + $0x1], 0  ;;  %s882_s21 = smov 0   ;;  %s884_s22 = smov 0  }
   0x2   :  { %s886_s23 = smov 0   ;;  %s888_s24 = smov 0  }
   0x3   :  { %s890_s25 = smov 0   ;;  %s892_s26 = smov 0  }
   0x4   :  { %s894_s27 = smov 0   ;;  %s896_s28 = smov 0  }
   0x5 LB: > { %1030 = sst [smem:[#allocation6_spill]] %s835_s26  ;;  %s654_s29 = sadd.s32 4294967295, %s843_s28   ;;  %s843_s28 = sphi %s896_s28, %s19_s28   ;;  %s839_s27 = sphi %s894_s27, %s1041_s27   ;;  %s835_s26 = sphi %s892_s26, %s1040_s26   ;;  %s831_s25 = sphi %s890_s25, %s1039_s25   ;;  %s827_s24 = sphi %s888_s24, %s1038_s24   ;;  %s823_s23 = sphi %s886_s23, %s1044_s23   ;;  %s819_s22 = sphi %s884_s22, %s1043_s22   ;;  %s815_s21 = sphi %s882_s21, %s1042_s21  }
   0x6   : > { %1031 = sst [smem:[#allocation7_spill]] %s839_s27  ;;  %s655_s30 = sadd.s32 4294967294, %s843_s28  }
   0x7   : > { %s34_s7 = sadd.s32 1, %s835_s26  ;;  %s38_s8 = sadd.s32 1, %s839_s27 }
   0x8   : > { %p36_p0 = scmp.ge.s32.totalorder %s34_s7, 2  ;;  %p221_p1 = scmp.ne.s32.totalorder %s823_s23, %s819_s22 }
   0x9   : > { %p222_p2 = scmp.eq.s32.totalorder %s654_s29, 3  ;;  %p227_p5 = scmp.ne.s32.totalorder %s819_s22, %s815_s21 }
   0xa   : > { %s1046_s7 = smov (%p36_p0, %s34_s7), 0  ;;  %s1048_s8 = smov (!%p36_p0, %s38_s8), %s839_s27 }
   0xb   : > { %1032 = sst [smem:[#allocation8_spill]] %s1046_s7  ;;  %s207_s9 = ssub.s32 %s835_s26, %s1046_s7 }
   0xc   : > { %p933_p3 = por %p222_p2, %p221_p1  ;;  %p40_p4 = scmp.ge.s32.totalorder %s1048_s8, 2 }
   0xd   : > { %p228_p6 = scmp.eq.s32.totalorder %s655_s30, 3  ;;  %p658_p7 = scmp.ge.s32.totalorder %s843_s28, 1 }
   0xe   : > { %s1050_s8 = smov (%p40_p4, %s1048_s8), 0  ;;  %p298_p9 = scmp.lt.s32.totalorder %s843_s28, 5 }
   0xf   : > { %1034 = sst [smem:[#allocation9_spill]] %s1050_s8  ;;  %p942_p8 = por %p228_p6, %p227_p5 }
  0x10   : > { %s206_s12 = ssub.s32 %s839_s27, %s1050_s8  ;;  %s211_s13 = sadd.s32 1, %s823_s23 }
  0x11   : > { %s208_s14 = sor.u32 %s207_s9, %s206_s12  ;;  %p299_p10 = pnand %p658_p7, %p298_p9 }
  0x12   : > { %p209_p11 = scmp.eq.s32.totalorder %s208_s14, 0  ;;  %p357_p12 = scmp.lt.s32.totalorder (!%p299_p10), %s831_s25, 1 }
  0x13   : > { %302 = sbr.rel (%p299_p10) target bundleno = 386 (0x182), region = 44  ;;  %p385_p13 = scmp.lt.s32.totalorder (!%p299_p10), %s827_s24, 1 }
  0x14   : > { %s951_s15 = scalar_select %p209_p11, %s823_s23, %s211_s13  }
  0x15   : > { %s666_s26 = sshll.u32 (!%p299_p10), %s831_s25, 1  ;;  %s354_s27 = sand.u32 (!%p299_p10), 1, %s819_s22  }
  0x16   : > { %1036 = sst [smem:[#allocation10_spill]] %s951_s15  ;;  %s506_s7 = sadd.s32 (!%p299_p10), %s827_s24, %s666_s26 }
  0x17   : > { %s667_s15 = sshll.u32 (!%p299_p10), %s506_s7, 2  ;;  %s769_s30 = scalar_lea.hbm (!%p299_p10), %s1025_s6, 16 }
  0x18   : > { %v845_v0 = vmov 0   ;;  %s358_s16 = scalar_select %p357_p12, %s831_s25, 1  ;;  %v846_v18 = vmov 0.0   ;;  %vm464_vm0 = vcmask 64512  }
  0x19   : > { %744 = vset.pattern.permute.xlu1 %v845_v0  ;;  %743 = vset.pattern.permute.xlu0 %v845_v0  ;;  %s386_s17 = scalar_select %p385_p13, %s827_s24, 1  ;;  %395 = vst [vmem:[#allocation2] sm:$0xf] %v846_v18 }
  0x1a   : > { %s660_s18 = sshll.u32 %s358_s16, 3  ;;  %s508_s9 = scalar_lea.hbm %s1025_s6, %s667_s15 }
  0x1b   : > { %s377_s29 = scalar_lea.vmem %s1021_s2, %s660_s18  ;;  %s363_s12 = scalar_lea.vmem %s1019_s0, %s660_s18 }
  0x1c   : > { %v398_v1 = vld [vmem:[%s377_s29] sm:$0xff]  ;;  %s387_s8 = scalar_lea.vmem %s1023_s4, %s386_s17  ;;  %s390_s16 = scalar_lea.vmem %s1024_s5, %s386_s17 }
  0x1d   : > { %v396_v2 = vld [vmem:[%s363_s12] sm:$0xff]  ;;  %424 = vperm.xlu1 %744, %v398_v1   ;;  %s370_s19 = scalar_lea.vmem %s1020_s1, %s660_s18  ;;  %s384_s29 = scalar_lea.vmem %s1022_s3, %s660_s18 }
  0x1e   : > { %403 = vperm.xlu0 %743, %v396_v2   ;;  %v397_v3 = vld [vmem:[%s370_s19] sm:$0xff]  ;;  %s512_s14 = sshll.u32 %s508_s9, 4  ;;  %s496_s25 = scalar_lea.sflag [#allocation4], %s354_s27  ;;  %s513_s14 = int_to_ptr.hbm [resolvable:$true] %s512_s14 }
  0x1f   : > { %v430_v4 = vld [vmem:[%s384_s29] sm:$0xff]  ;;  %s763_s24 = sshra.s32 %s513_s14, 4  ;;  %s764_s24 = int_to_ptr.hbm [resolvable:$true] %s763_s24 }
  0x20   : > { %v745_v6 = vld [vmem:[%s387_s8] ss:$0 sm:$0xff]  ;;  %s659_s8 = sshll.u32 %s354_s27, 2  ;;  %p770_p4 = scmp.lt.s32.totalorder %s764_s24, %s1025_s6 }
  0x21   : > { %v746_v8 = vld [vmem:[%s390_s16] ss:$0 sm:$0xff]  ;;  %s356_s12 = scalar_lea.vmem [#allocation3], %s659_s8  ;;  %s765_s16 = scalar_lea.hbm %s764_s24, 4 }
  0x22   : > { %v431_v20 = vld [vmem:[#allocation2] sm:$0xf]  ;;  %s510_s13 = sshll.u32 %s356_s12, 4  ;;  %p766_p0 = scmp.ne.s32.totalorder %s764_s24, %s765_s16  ;;  %s511_s13 = int_to_ptr.vmem [resolvable:$true] %s510_s13 }
  0x23   : > { %p771_p5 = scmp.lt.s32.totalorder %s769_s30, %s765_s16 }
  0x24   : > { %p767_p1 = pnand %p766_p0, %p933_p3 }
  0x25   : > { %p772_p6 = por %p771_p5, %p770_p4 }
  0x26   : > { %412 = vperm.xlu0 %743, %v397_v3   ;;  %p768_p2 = pneg %p767_p1 }
  0x28   : > { %p773_p7 = pnand %p772_p6, %p768_p2 }
  0x52   : > { %432 = vxpose.xlu1.b32.start.end [1/1] (short) (narrow) %v430_v4, 8 }
  0x8f   : > { %v425_v14 = vpop.permute.xlu1 %424 }
  0x90   : > { %v404_v5 = vpop.permute.xlu0 %403 }
  0x91   : > { %v409_v7 = vsub.f32 %v404_v5, %v745_v6 }
  0x93   : > { %v419_v10 = vmul.f32 %v409_v7, %v409_v7 }
  0x98   : > { %v413_v9 = vpop.permute.xlu0 %412 }
  0x99   : > { %v418_v11 = vsub.f32 %v413_v9, %v746_v8 }
  0x9b   : > { %v420_v12 = vmul.f32 %v418_v11, %v418_v11 }
  0x9d   : > { %v421_v13 = vadd.f32 %v420_v12, %v419_v10 }
  0x9f   : > { %v427_v15 = vmul.f32 %v425_v14, %v421_v13 }
  0xa1   : > { %v428_v16 = vmul.f32 1.442695, %v427_v15 }
  0xa3   : > { %747 = vpow2.f32 %v428_v16 }
  0xa9   : > { %v748_v17 = vpop.eup %747 }
  0xaa   : > { %483 = vmatpush.msra.mxu0 %v748_v17 }
  0xf6   : > { %v448_v19 = vpop.trf.xlu1 }
  0xf7   : > { %664 = vmatmul.msk.f32.vlgmr.msra.gmra.mxu0 %vm464_vm0, %v448_v19 }
 0x174   : > { %v485_v21 = vpop.f32.mrf.mxu0 }
 0x175   : > { %v488_v22 = vadd.f32 %v485_v21, %v431_v20 }
 0x177   : > { %489 = vst [vmem:[#allocation2] sm:$0xf] %v488_v22 }
 0x17e   : > { %v493_v23 = vld [vmem:[#allocation2] sm:$0xf] }
 0x17f   : > { %494 = vst [vmem:[%s356_s12] sm:$0xf] %v493_v23 }
 0x180   : > { %776 = shalt.err (!%p773_p7)
}
 0x181   : > { %670 = dma.vmem_to_hbm [thread:$0]  (%p933_p3), %s511_s13, 64, %s513_s14, %s496_s25  }
 0x182 PF: > { %p676_p9 = scmp.ge.s32.totalorder %s843_s28, 2  ;;  %s524_s27 = sand.u32 1, %s815_s21  }
 0x183   : > { %s525_s7 = scalar_lea.sflag [#allocation4], %s524_s27 }
 0x184   : > { %p673_p10 = pnand %p676_p9, %p942_p8 }
 0x186   : > { %p674_p11 = pneg %p673_p10 }
 0x188   : > { %810 = dma.done.wait (%p674_p11), %s525_s7, 64  }
 0x189   : > { %812 = vsyncadd (%p674_p11), %s525_s7, 4294967232  ;;  %s19_s28 = sadd.s32 1, %s843_s28   ;;  %s1037_s8 = sld [smem:[#allocation10_spill]] }
 0x18a   : > { %p16_p12 = scmp.ge.s32.totalorder %s19_s28, 6   ;;  %s1038_s24 = sld [smem:[#allocation6_spill]] }
 0x18b   : > { %s1039_s25 = sld [smem:[#allocation7_spill]]  ;;  %s1042_s21 = smov %s819_s22 }
 0x18c   : > { %s1040_s26 = sld [smem:[#allocation8_spill]]  ;;  %s1043_s22 = smov %s823_s23 }
 0x18d   : > { %s1041_s27 = sld [smem:[#allocation9_spill]]  ;;  %18 = sbr.rel (!%p16_p12) target bundleno = 5 (0x5), region = 102 }
 0x18f   : > { %s1044_s23 = smov %s1037_s8 }
 0x192   :  { %531 = vsyncpa [#allocation4], 1 }
 0x193   :  { %533 = vsyncpa [#allocation4 + $0x1], 1 }

</bundles_post_ra>
